<compile_context>
chip_gen: v5e
topology: v5e:2x2
jax: 0.10.0
libtpu: 0.0.40
codegen_flags: <defaults>
</compile_context>

<pallas_src>
import functools

import jax
import jax.numpy as jnp
from jax import lax
from jax.experimental import pallas as pl
from jax.experimental.pallas import tpu as pltpu
import numpy as np

_BN_EPS = 1e-5


def _round_up(x, m):
    return (x + m - 1) // m * m


# ---------------------------- Pallas kernels ---------------------------------

def _conv_stats_kernel(patches_ref, wt_ref, h_ref, psum_ref, psumsq_ref):
    """One M-tile: im2col matmul on the MXU + single-pass BN partial sums.

    patches_ref: (TM, K)      compute dtype (bf16 fast path)
    wt_ref:      (K, OCp)     compute dtype
    h_ref:       (TM, OCp)    f32 pre-BN conv activations (written back)
    psum_ref / psumsq_ref: (1, 1, OCp) f32 per-tile partial sum / sum-of-squares
    """
    h = jnp.dot(patches_ref[...], wt_ref[...],
                preferred_element_type=jnp.float32)
    h_ref[...] = h
    # Single pass over h: sum and sum of squares; mean/var finished outside so
    # the statistics stay global across all M tiles.
    psum_ref[...] = jnp.sum(h, axis=0, keepdims=True)[None]
    psumsq_ref[...] = jnp.sum(h * h, axis=0, keepdims=True)[None]


def _bn_relu_kernel(h_ref, scale_ref, shift_ref, out_ref):
    """One M-tile: y = relu(h * scale + shift), lane-dense (OCp-wide) stores."""
    out_ref[...] = jnp.maximum(
        h_ref[...] * scale_ref[...] + shift_ref[...], 0.0
    ).astype(out_ref.dtype)


# ------------------------------- wrapper --------------------------------------

def conv_layer_forward(x, weight, bias, gamma, beta, *, stride=1,
                       block_m=512, compute_dtype=jnp.bfloat16):
    """ConvLayer forward: Conv2d(valid, stride) -> BatchNorm2d(train) -> ReLU.

    x: (N, C, H, W) f32.  weight: (OC, C, KH, KW).  bias/gamma/beta: (OC,).
    Returns (N, OC, OH, OW) f32.

    `bias` is accepted for interface fidelity but not applied: training-mode
    BatchNorm subtracts the per-channel batch mean immediately after the conv,
    so a per-channel constant bias cancels exactly.
    """
    del bias  # exactly cancelled by the BN mean subtraction
    N, C, H, W = x.shape
    OC, _, KH, KW = weight.shape
    OH = (H - KH) // stride + 1
    OW = (W - KW) // stride + 1
    M = N * OH * OW
    K = C * KH * KW

    OCp = _round_up(OC, 128)           # lane-dense MXU N-dim / stores
    Mp = _round_up(M, block_m)
    num_m = Mp // block_m

    # ---- glue: channels-last im2col (only relayout is on x itself) ----------
    x_nhwc = jnp.transpose(x, (0, 2, 3, 1)).astype(compute_dtype)   # (N,H,W,C)
    cols = []
    for ki in range(KH):
        for kj in range(KW):
            cols.append(x_nhwc[:, ki:ki + stride * OH:stride,
                               kj:kj + stride * OW:stride, :])
    # (N, OH, OW, KH*KW, C) -> (M, K); K ordered (ki, kj, c), c fastest.
    patches = jnp.stack(cols, axis=3).reshape(M, K)
    if Mp != M:
        patches = jnp.pad(patches, ((0, Mp - M), (0, 0)))

    # weight OIHW -> (OC, KH, KW, C) -> (K, OC); zero-pad OC up to OCp lanes.
    wt = jnp.transpose(weight, (0, 2, 3, 1)).reshape(OC, K).T
    wt = jnp.pad(wt, ((0, 0), (0, OCp - OC))).astype(compute_dtype)

    # ---- pass 1: tiled MXU conv + per-tile BN partial sums -------------------
    h, psum, psumsq = pl.pallas_call(
        _conv_stats_kernel,
        grid=(num_m,),
        in_specs=[
            pl.BlockSpec((block_m, K), lambda i: (i, 0)),
            pl.BlockSpec((K, OCp), lambda i: (0, 0)),
        ],
        out_specs=[
            pl.BlockSpec((block_m, OCp), lambda i: (i, 0)),
            pl.BlockSpec((1, 1, OCp), lambda i: (i, 0, 0)),
            pl.BlockSpec((1, 1, OCp), lambda i: (i, 0, 0)),
        ],
        out_shape=[
            jax.ShapeDtypeStruct((Mp, OCp), jnp.float32),
            jax.ShapeDtypeStruct((num_m, 1, OCp), jnp.float32),
            jax.ShapeDtypeStruct((num_m, 1, OCp), jnp.float32),
        ],
        compiler_params=pltpu.CompilerParams(
            dimension_semantics=("parallel",)),
    )(patches, wt)

    # ---- tiny OC-sized BN epilogue in plain JAX (global over all M rows) -----
    # Zero-padded rows contribute 0 to both sums (no bias added), so dividing
    # by the true M gives exact global statistics (biased variance, eps=1e-5).
    s = jnp.sum(psum[:, 0, :], axis=0)                       # (OCp,)
    sq = jnp.sum(psumsq[:, 0, :], axis=0)                    # (OCp,)
    mean = s * (1.0 / M)
    var = jnp.maximum(sq * (1.0 / M) - mean * mean, 0.0)
    gamma_p = jnp.pad(gamma.astype(jnp.float32), (0, OCp - OC))
    beta_p = jnp.pad(beta.astype(jnp.float32), (0, OCp - OC))
    scale_v = gamma_p * lax.rsqrt(var + _BN_EPS)
    shift_v = beta_p - mean * scale_v
    scale = scale_v.reshape(1, OCp)
    shift = shift_v.reshape(1, OCp)

    # ---- pass 2: tiled normalize + ReLU, lane-dense stores -------------------
    out2d = pl.pallas_call(
        _bn_relu_kernel,
        grid=(num_m,),
        in_specs=[
            pl.BlockSpec((block_m, OCp), lambda i: (i, 0)),
            pl.BlockSpec((1, OCp), lambda i: (0, 0)),
            pl.BlockSpec((1, OCp), lambda i: (0, 0)),
        ],
        out_specs=pl.BlockSpec((block_m, OCp), lambda i: (i, 0)),
        out_shape=jax.ShapeDtypeStruct((Mp, OCp), jnp.float32),
        compiler_params=pltpu.CompilerParams(
            dimension_semantics=("parallel",)),
    )(h, scale, shift)

    # ---- back to NCHW (PyTorch layout); drop M / OC padding ------------------
    out = out2d[:M, :OC].reshape(N, OH, OW, OC)
    return jnp.transpose(out, (0, 3, 1, 2))


# ------------------------------ reference -------------------------------------

def _reference(x, weight, bias, gamma, beta, *, stride=1,
               compute_dtype=jnp.bfloat16):
    """Pure-JAX reference with the same operand precision (bf16 in, f32 acc)."""
    h = lax.conv_general_dilated(
        x.astype(compute_dtype), weight.astype(compute_dtype),
        window_strides=(stride, stride), padding="VALID",
        dimension_numbers=("NCHW", "OIHW", "NCHW"),
        preferred_element_type=jnp.float32)
    h = h + bias.reshape(1, -1, 1, 1)
    mean = jnp.mean(h, axis=(0, 2, 3), keepdims=True)
    var = jnp.mean((h - mean) ** 2, axis=(0, 2, 3), keepdims=True)
    h = (h - mean) / jnp.sqrt(var + _BN_EPS) * gamma.reshape(1, -1, 1, 1) \
        + beta.reshape(1, -1, 1, 1)
    return jnp.maximum(h, 0.0)


if __name__ == "__main__":
    # ConvLayer(in_channels=4, out_channels=8, kernel_size=3, stride=1) on
    # x of shape (2, 4, 16, 16).
    N, C, H, W = 2, 4, 16, 16
    OC, KH, KW, STRIDE = 8, 3, 3, 1

    key = jax.random.PRNGKey(0)
    kx, kw, kb = jax.random.split(key, 3)
    x = jax.random.normal(kx, (N, C, H, W), dtype=jnp.float32)
    fan_in = C * KH * KW
    weight = jax.random.uniform(kw, (OC, C, KH, KW), jnp.float32,
                                minval=-1.0, maxval=1.0) / jnp.sqrt(fan_in)
    bias = jax.random.uniform(kb, (OC,), jnp.float32,
                              minval=-1.0, maxval=1.0) / jnp.sqrt(fan_in)
    gamma = jnp.ones((OC,), jnp.float32)   # BatchNorm2d default init
    beta = jnp.zeros((OC,), jnp.float32)

    # block_m=128 exercises the multi-tile grid + global two-phase BN reduction
    # at this toy size (M=392 -> 4 tiles); use the default 512 for real shapes.
    fwd = jax.jit(functools.partial(conv_layer_forward, stride=STRIDE,
                                    block_m=128))
    out = jax.block_until_ready(fwd(x, weight, bias, gamma, beta))

    ref = _reference(x, weight, bias, gamma, beta, stride=STRIDE)
    # bf16 MXU operands (f32 accumulate) on both sides -> bf16-level tolerance.
    np.testing.assert_allclose(np.asarray(out), np.asarray(ref),
                               atol=2e-2, rtol=2e-2)

    print("KERNEL_OK")
</pallas_src>

<mosaic_0001>
module attributes {stable_mosaic.version = 11 : i64} {
  func.func @_conv_stats_kernel(%arg0: i32, %arg1: memref<128x36xbf16, #tpu.memory_space<vmem>>, %arg2: memref<36x128xbf16, #tpu.memory_space<vmem>>, %arg3: memref<128x128xf32, #tpu.memory_space<vmem>>, %arg4: memref<1x1x128xf32, #tpu.memory_space<vmem>>, %arg5: memref<1x1x128xf32, #tpu.memory_space<vmem>>) attributes {dimension_semantics = [#tpu.dimension_semantics<parallel>], iteration_bounds = array<i64: 4>, scalar_prefetch = 0 : i64, scratch_operands = 0 : i64, tpu.core_type = #tpu.core_type<tc>, window_params = [{transform_indices = @transform_0, window_bounds = array<i64: 128, 36>}, {pipeline_mode = #tpu.pipeline_mode<synchronous>, transform_indices = @transform_1, window_bounds = array<i64: 36, 128>}, {transform_indices = @transform_2, window_bounds = array<i64: 128, 128>}, {transform_indices = @transform_3, window_bounds = array<i64: 1, 1, 128>}, {transform_indices = @transform_4, window_bounds = array<i64: 1, 1, 128>}]} {
    %c0 = arith.constant 0 : index
    %c0_0 = arith.constant 0 : index
    %0 = vector.load %arg1[%c0, %c0_0] : memref<128x36xbf16, #tpu.memory_space<vmem>>, vector<128x36xbf16>
    %c0_1 = arith.constant 0 : index
    %c0_2 = arith.constant 0 : index
    %1 = vector.load %arg2[%c0_1, %c0_2] : memref<36x128xbf16, #tpu.memory_space<vmem>>, vector<36x128xbf16>
    %cst = arith.constant dense<0.000000e+00> : vector<128x128xf32>
    %2 = tpu.matmul %0, %1, %cst {dimension_numbers = #tpu.dot_dimension_numbers<[1], [0], [0], [1], [0, 0, 1, 1], [], []>} : vector<128x36xbf16>, vector<36x128xbf16>, vector<128x128xf32> -> vector<128x128xf32>
    %c0_3 = arith.constant 0 : index
    %c0_4 = arith.constant 0 : index
    %3 = vector.load %arg3[%c0_3, %c0_4] : memref<128x128xf32, #tpu.memory_space<vmem>>, vector<128x128xf32>
    tpu.vector_store %arg3[%c0_3, %c0_4], %2 {strides = array<i32>} : memref<128x128xf32, #tpu.memory_space<vmem>>, vector<128x128xf32>,
    %cst_5 = arith.constant dense<0.000000e+00> : vector<128xf32>
    %4 = vector.multi_reduction <add>, %2, %cst_5 [0] : vector<128x128xf32> to vector<128xf32>
    %5 = vector.shape_cast %4 : vector<128xf32> to vector<1x128xf32>
    %6 = vector.shape_cast %5 : vector<1x128xf32> to vector<1x1x128xf32>
    %c0_6 = arith.constant 0 : index
    %c0_7 = arith.constant 0 : index
    %c0_8 = arith.constant 0 : index
    %7 = vector.load %arg4[%c0_6, %c0_7, %c0_8] : memref<1x1x128xf32, #tpu.memory_space<vmem>>, vector<1x1x128xf32>
    tpu.vector_store %arg4[%c0_6, %c0_7, %c0_8], %6 {strides = array<i32>} : memref<1x1x128xf32, #tpu.memory_space<vmem>>, vector<1x1x128xf32>,
    %8 = arith.mulf %2, %2 : vector<128x128xf32>
    %cst_9 = arith.constant dense<0.000000e+00> : vector<128xf32>
    %9 = vector.multi_reduction <add>, %8, %cst_9 [0] : vector<128x128xf32> to vector<128xf32>
    %10 = vector.shape_cast %9 : vector<128xf32> to vector<1x128xf32>
    %11 = vector.shape_cast %10 : vector<1x128xf32> to vector<1x1x128xf32>
    %c0_10 = arith.constant 0 : index
    %c0_11 = arith.constant 0 : index
    %c0_12 = arith.constant 0 : index
    %12 = vector.load %arg5[%c0_10, %c0_11, %c0_12] : memref<1x1x128xf32, #tpu.memory_space<vmem>>, vector<1x1x128xf32>
    tpu.vector_store %arg5[%c0_10, %c0_11, %c0_12], %11 {strides = array<i32>} : memref<1x1x128xf32, #tpu.memory_space<vmem>>, vector<1x1x128xf32>,
    return
  }
  func.func @transform_0(%arg0: i32) -> (i32, i32) {
    %c0_i32 = arith.constant 0 : i32
    %c0_i32_0 = arith.constant 0 : i32
    return %arg0, %c0_i32 : i32, i32
  }
  func.func @transform_1(%arg0: i32) -> (i32, i32) {
    %c0_i32 = arith.constant 0 : i32
    %c0_i32_0 = arith.constant 0 : i32
    %c0_i32_1 = arith.constant 0 : i32
    return %c0_i32, %c0_i32_0 : i32, i32
  }
  func.func @transform_2(%arg0: i32) -> (i32, i32) {
    %c0_i32 = arith.constant 0 : i32
    %c0_i32_0 = arith.constant 0 : i32
    return %arg0, %c0_i32 : i32, i32
  }
  func.func @transform_3(%arg0: i32) -> (i32, i32, i32) {
    %c0_i32 = arith.constant 0 : i32
    %c0_i32_0 = arith.constant 0 : i32
    %c0_i32_1 = arith.constant 0 : i32
    return %arg0, %c0_i32, %c0_i32_0 : i32, i32, i32
  }
  func.func @transform_4(%arg0: i32) -> (i32, i32, i32) {
    %c0_i32 = arith.constant 0 : i32
    %c0_i32_0 = arith.constant 0 : i32
    %c0_i32_1 = arith.constant 0 : i32
    return %arg0, %c0_i32, %c0_i32_0 : i32, i32, i32
  }
}

module attributes {stable_mosaic.version = 11 : i64} {
  func.func @_bn_relu_kernel(%arg0: i32, %arg1: memref<128x128xf32, #tpu.memory_space<vmem>>, %arg2: memref<1x128xf32, #tpu.memory_space<vmem>>, %arg3: memref<1x128xf32, #tpu.memory_space<vmem>>, %arg4: memref<128x128xf32, #tpu.memory_space<vmem>>) attributes {dimension_semantics = [#tpu.dimension_semantics<parallel>], iteration_bounds = array<i64: 4>, scalar_prefetch = 0 : i64, scratch_operands = 0 : i64, tpu.core_type = #tpu.core_type<tc>, window_params = [{transform_indices = @transform_0, window_bounds = array<i64: 128, 128>}, {pipeline_mode = #tpu.pipeline_mode<synchronous>, transform_indices = @transform_1, window_bounds = array<i64: 1, 128>}, {pipeline_mode = #tpu.pipeline_mode<synchronous>, transform_indices = @transform_2, window_bounds = array<i64: 1, 128>}, {transform_indices = @transform_3, window_bounds = array<i64: 128, 128>}]} {
    %c0 = arith.constant 0 : index
    %c0_0 = arith.constant 0 : index
    %0 = vector.load %arg1[%c0, %c0_0] : memref<128x128xf32, #tpu.memory_space<vmem>>, vector<128x128xf32>
    %c0_1 = arith.constant 0 : index
    %c0_2 = arith.constant 0 : index
    %1 = vector.load %arg2[%c0_1, %c0_2] : memref<1x128xf32, #tpu.memory_space<vmem>>, vector<1x128xf32>
    %2 = vector.broadcast %1 : vector<1x128xf32> to vector<128x128xf32>
    %3 = arith.mulf %0, %2 : vector<128x128xf32>
    %c0_3 = arith.constant 0 : index
    %c0_4 = arith.constant 0 : index
    %4 = vector.load %arg3[%c0_3, %c0_4] : memref<1x128xf32, #tpu.memory_space<vmem>>, vector<1x128xf32>
    %5 = vector.broadcast %4 : vector<1x128xf32> to vector<128x128xf32>
    %6 = arith.addf %3, %5 : vector<128x128xf32>
    %cst = arith.constant 0.000000e+00 : f32
    %7 = vector.broadcast %cst : f32 to vector<128x128xf32>
    %8 = arith.maximumf %6, %7 : vector<128x128xf32>
    %c0_5 = arith.constant 0 : index
    %c0_6 = arith.constant 0 : index
    %9 = vector.load %arg4[%c0_5, %c0_6] : memref<128x128xf32, #tpu.memory_space<vmem>>, vector<128x128xf32>
    tpu.vector_store %arg4[%c0_5, %c0_6], %8 {strides = array<i32>} : memref<128x128xf32, #tpu.memory_space<vmem>>, vector<128x128xf32>,
    return
  }
  func.func @transform_0(%arg0: i32) -> (i32, i32) {
    %c0_i32 = arith.constant 0 : i32
    %c0_i32_0 = arith.constant 0 : i32
    return %arg0, %c0_i32 : i32, i32
  }
  func.func @transform_1(%arg0: i32) -> (i32, i32) {
    %c0_i32 = arith.constant 0 : i32
    %c0_i32_0 = arith.constant 0 : i32
    %c0_i32_1 = arith.constant 0 : i32
    return %c0_i32, %c0_i32_0 : i32, i32
  }
  func.func @transform_2(%arg0: i32) -> (i32, i32) {
    %c0_i32 = arith.constant 0 : i32
    %c0_i32_0 = arith.constant 0 : i32
    %c0_i32_1 = arith.constant 0 : i32
    return %c0_i32, %c0_i32_0 : i32, i32
  }
  func.func @transform_3(%arg0: i32) -> (i32, i32) {
    %c0_i32 = arith.constant 0 : i32
    %c0_i32_0 = arith.constant 0 : i32
    return %arg0, %c0_i32 : i32, i32
  }
}

</mosaic_0001>

<bundles_post_ra>
// kernel: conv_layer_forward.3
= control target key start
LH: loop header
LB: loop body
LE: loop exit
PB: predicated region body
PF: predicated region fallthrough
CT: control target
= control target key end

     0   :  { %s367_s12 = smov 0   ;;  %s444_s0 = inlined_call_operand.vmem [shape: f32[512,128], index: 0, kind: input, shape index: {}]   ;;  %s445_s1 = inlined_call_operand.vmem [shape: f32[1,128], index: 1, kind: input, shape index: {}]   ;;  %s446_s2 = inlined_call_operand.vmem [shape: f32[1,128], index: 2, kind: input, shape index: {}]   ;;  %s447_s3 = inlined_call_operand.vmem [shape: f32[512,128], index: 3, kind: output, shape index: {}]  }
   0x1 LB: > { %s318_s13 = sadd.s32 4294967295, %s345_s12   ;;  %p322_p0 = scmp.ge.s32.totalorder %s345_s12, 1  ;;  %s345_s12 = sphi %s367_s12, %s13_s12  }
   0x2   : > { %p138_p1 = scmp.lt.s32.totalorder %s345_s12, 5 }
   0x4   : > { %p139_p2 = pnand %p322_p0, %p138_p1 }
   0x5   : > { %s323_s14 = sshll.u32 (!%p139_p2), %s318_s13, 4 }
   0x6   : > { %142 = sbr.rel (%p139_p2) target bundleno = 37 (0x25), region = 32  ;;  %p163_p3 = scmp.lt.s32.totalorder (!%p139_p2), %s323_s14, 63 }
   0xb   : > { %s449_s14 = smov (!%p163_p3, %s323_s14), 63  ;;  %v337_v0 = vld [vmem:[%s445_s1] ss:$0 sm:$0xff] }
   0xc   : > { %s324_s17 = sshll.u32 %s449_s14, 3  ;;  %v386_v1 = vld [vmem:[%s446_s2] ss:$0 sm:$0xff] }
   0xd   : > { %s381_s20 = scalar_lea.vmem %s444_s0, %s324_s17  ;;  %s402_s25 = scalar_lea.vmem %s447_s3, %s324_s17 }
   0xe   : > { %v174_v2 = vld [vmem:[%s381_s20] sm:$0xff]  ;;  %v175_v3 = vld [vmem:[%s381_s20 + $0x8] sm:$0xff]  ;;  %v176_v4 = vld [vmem:[%s381_s20 + $0x10] sm:$0xff] }
   0xf   : > { %v194_v5 = vmul.f32 %v337_v0, %v174_v2  ;;  %v195_v6 = vmul.f32 %v337_v0, %v175_v3  ;;  %v196_v7 = vmul.f32 %v337_v0, %v176_v4  ;;  %v177_v8 = vld [vmem:[%s381_s20 + $0x18] sm:$0xff]  ;;  %v178_v9 = vld [vmem:[%s381_s20 + $0x20] sm:$0xff]  ;;  %v179_v10 = vld [vmem:[%s381_s20 + $0x28] sm:$0xff] }
  0x10   : > { %v197_v11 = vmul.f32 %v337_v0, %v177_v8  ;;  %v198_v12 = vmul.f32 %v337_v0, %v178_v9  ;;  %v199_v13 = vmul.f32 %v337_v0, %v179_v10  ;;  %v180_v14 = vld [vmem:[%s381_s20 + $0x30] sm:$0xff]  ;;  %v181_v15 = vld [vmem:[%s381_s20 + $0x38] sm:$0xff]  ;;  %v182_v24 = vld [vmem:[%s381_s20 + $0x40] sm:$0xff] }
  0x11   : > { %v214_v16 = vadd.f32 %v386_v1, %v194_v5  ;;  %v215_v17 = vadd.f32 %v386_v1, %v195_v6  ;;  %v216_v18 = vadd.f32 %v386_v1, %v196_v7  ;;  %v200_v19 = vmul.f32 %v337_v0, %v180_v14  ;;  %v183_v25 = vld [vmem:[%s381_s20 + $0x48] sm:$0xff]  ;;  %v184_v26 = vld [vmem:[%s381_s20 + $0x50] sm:$0xff]  ;;  %v185_v31 = vld [vmem:[%s381_s20 + $0x58] sm:$0xff] }
  0x12   : > { %v217_v20 = vadd.f32 %v386_v1, %v197_v11  ;;  %v218_v21 = vadd.f32 %v386_v1, %v198_v12  ;;  %v219_v22 = vadd.f32 %v386_v1, %v199_v13  ;;  %v201_v23 = vmul.f32 %v337_v0, %v181_v15  ;;  %v186_v32 = vld [vmem:[%s381_s20 + $0x60] sm:$0xff]  ;;  %v187_v33 = vld [vmem:[%s381_s20 + $0x68] sm:$0xff]  ;;  %v188_v37 = vld [vmem:[%s381_s20 + $0x70] sm:$0xff] }
  0x13   : > { %v230_v27 = vmax.f32 %v214_v16, 0.0  ;;  %v231_v28 = vmax.f32 %v215_v17, 0.0  ;;  %v232_v29 = vmax.f32 %v216_v18, 0.0  ;;  %v220_v30 = vadd.f32 %v386_v1, %v200_v19  ;;  %v189_v42 = vld [vmem:[%s381_s20 + $0x78] sm:$0xff] }
  0x14   : > { %v233_v34 = vmax.f32 %v217_v20, 0.0  ;;  %v234_v35 = vmax.f32 %v218_v21, 0.0  ;;  %v221_v36 = vadd.f32 %v386_v1, %v201_v23  ;;  %v235_v38 = vmax.f32 %v219_v22, 0.0 }
  0x15   : > { %246 = vst [vmem:[%s402_s25] sm:$0xff] %v230_v27  ;;  %v202_v39 = vmul.f32 %v337_v0, %v182_v24  ;;  %v203_v40 = vmul.f32 %v337_v0, %v183_v25  ;;  %v204_v41 = vmul.f32 %v337_v0, %v184_v26  ;;  %v236_v43 = vmax.f32 %v220_v30, 0.0 }
  0x16   : > { %247 = vst [vmem:[%s402_s25 + $0x8] sm:$0xff] %v231_v28  ;;  %v205_v44 = vmul.f32 %v337_v0, %v185_v31  ;;  %v206_v45 = vmul.f32 %v337_v0, %v186_v32  ;;  %v207_v46 = vmul.f32 %v337_v0, %v187_v33  ;;  %v208_v50 = vmul.f32 %v337_v0, %v188_v37 }
  0x17   : > { %248 = vst [vmem:[%s402_s25 + $0x10] sm:$0xff] %v232_v29  ;;  %v222_v47 = vadd.f32 %v386_v1, %v202_v39  ;;  %v223_v48 = vadd.f32 %v386_v1, %v203_v40  ;;  %v224_v49 = vadd.f32 %v386_v1, %v204_v41  ;;  %v237_v51 = vmax.f32 %v221_v36, 0.0 }
  0x18   : > { %249 = vst [vmem:[%s402_s25 + $0x18] sm:$0xff] %v233_v34  ;;  %v225_v52 = vadd.f32 %v386_v1, %v205_v44  ;;  %v209_v53 = vmul.f32 %v337_v0, %v189_v42  ;;  %v226_v55 = vadd.f32 %v386_v1, %v206_v45  ;;  %v227_v57 = vadd.f32 %v386_v1, %v207_v46 }
  0x19   : > { %250 = vst [vmem:[%s402_s25 + $0x20] sm:$0xff] %v234_v35  ;;  %v238_v54 = vmax.f32 %v222_v47, 0.0  ;;  %v239_v56 = vmax.f32 %v223_v48, 0.0  ;;  %v240_v58 = vmax.f32 %v224_v49, 0.0  ;;  %v228_v59 = vadd.f32 %v386_v1, %v208_v50 }
  0x1a   : > { %251 = vst [vmem:[%s402_s25 + $0x28] sm:$0xff] %v235_v38  ;;  %v241_v60 = vmax.f32 %v225_v52, 0.0  ;;  %v229_v61 = vadd.f32 %v386_v1, %v209_v53  ;;  %v242_v62 = vmax.f32 %v226_v55, 0.0  ;;  %v243_v63 = vmax.f32 %v227_v57, 0.0 }
  0x1b   : > { %252 = vst [vmem:[%s402_s25 + $0x30] sm:$0xff] %v236_v43  ;;  %v244_v0 = vmax.f32 %v228_v59, 0.0 }
  0x1c   : > { %253 = vst [vmem:[%s402_s25 + $0x38] sm:$0xff] %v237_v51  ;;  %v245_v2 = vmax.f32 %v229_v61, 0.0 }
  0x1d   : > { %254 = vst [vmem:[%s402_s25 + $0x40] sm:$0xff] %v238_v54 }
  0x1e   : > { %255 = vst [vmem:[%s402_s25 + $0x48] sm:$0xff] %v239_v56 }
  0x1f   : > { %256 = vst [vmem:[%s402_s25 + $0x50] sm:$0xff] %v240_v58 }
  0x20   : > { %257 = vst [vmem:[%s402_s25 + $0x58] sm:$0xff] %v241_v60 }
  0x21   : > { %258 = vst [vmem:[%s402_s25 + $0x60] sm:$0xff] %v242_v62 }
  0x22   : > { %259 = vst [vmem:[%s402_s25 + $0x68] sm:$0xff] %v243_v63 }
  0x23   : > { %260 = vst [vmem:[%s402_s25 + $0x70] sm:$0xff] %v244_v0 }
  0x24   : > { %261 = vst [vmem:[%s402_s25 + $0x78] sm:$0xff] %v245_v2 }
  0x25 PF: > { %s13_s12 = sadd.s32 1, %s345_s12  }
  0x26   : > { %p10_p4 = scmp.ge.s32.totalorder %s13_s12, 6  }
  0x28   :  { %12 = sbr.rel (!%p10_p4) target bundleno = 1 (0x1), region = 62 }

// kernel: conv_layer_forward.2
= control target key start
LH: loop header
LB: loop body
LE: loop exit
PB: predicated region body
PF: predicated region fallthrough
CT: control target
= control target key end

     0   :  { %s674_s15 = smov 0   ;;  %s741_s0 = inlined_call_operand.vmem [shape: bf16[512,36], index: 0, kind: input, shape index: {}]   ;;  %s742_s1 = inlined_call_operand.vmem [shape: bf16[36,128], index: 1, kind: input, shape index: {}]   ;;  %s743_s2 = inlined_call_operand.vmem [shape: f32[512,128], index: 2, kind: output, shape index: {0}]   ;;  %s744_s3 = inlined_call_operand.vmem [shape: f32[4,1,128], index: 3, kind: output, shape index: {1}]   ;;  %s745_s4 = inlined_call_operand.vmem [shape: f32[4,1,128], index: 4, kind: output, shape index: {2}]  }
   0x1 LB: > { %s680_s16 = sadd.s32 4294967295, %s647_s15   ;;  %p559_p0 = scmp.ge.s32.totalorder %s647_s15, 1  ;;  %s647_s15 = sphi %s674_s15, %s15_s15  }
   0x2   : > { %p168_p1 = scmp.lt.s32.totalorder %s647_s15, 5 }
   0x4   : > { %p169_p2 = pnand %p559_p0, %p168_p1 }
   0x5   : > { %s560_s19 = sshll.u32 (!%p169_p2), %s680_s16, 4  ;;  %p212_p4 = scmp.lt.s32.totalorder (!%p169_p2), %s680_s16, 3 }
   0x6   : > { %172 = sbr.rel (%p169_p2) target bundleno = 219 (0xdb), region = 28  ;;  %p201_p3 = scmp.lt.s32.totalorder (!%p169_p2), %s560_s19, 63 }
   0xb   : > { %v239_v0 = vld [vmem:[%s742_s1 + $0x10] sm:$0x3]  ;;  %vm320_vm0 = vcmask 1041408   ;;  %s747_s19 = smov (!%p201_p3, %s560_s19), 63  ;;  %v623_v4 = vld [vmem:[%s742_s1 + $0x8] sm:$0xff]  ;;  %v622_v5 = vld [vmem:[%s742_s1] sm:$0xff] }
   0xc   : > { %v289_v1 = vunpack.c.l.b16 %v239_v0  ;;  %s561_s22 = sshll.u32 %s747_s19, 2  ;;  %vm295_vm1 = vcmask 293888   ;;  %s563_s28 = sshll.u32 %s747_s19, 3 }
   0xd   : > { %s204_s27 = scalar_lea.vmem %s741_s0, %s561_s22  ;;  %s712_s5 = scalar_lea.vmem %s743_s2, %s563_s28 }
   0xe   : > { %v292_v2 = vpack.c.b16 %v289_v1, %v289_v1  ;;  %v614_v6 = vld [vmem:[%s204_s27] sm:$0xff]  ;;  %v616_v7 = vld [vmem:[%s204_s27 + $0x10] sm:$0xff]  ;;  %v615_v10 = vld [vmem:[%s204_s27 + $0x8] sm:$0xff]  ;;  %s749_s16 = smov (!%p212_p4, %s680_s16), 3 }
   0xf   : > { %v618_v8 = vld [vmem:[%s204_s27 + $0x20] sm:$0xff]  ;;  %v620_v9 = vld [vmem:[%s204_s27 + $0x30] sm:$0xff]  ;;  %v617_v11 = vld [vmem:[%s204_s27 + $0x18] sm:$0xff]  ;;  %s214_s8 = scalar_lea.vmem %s744_s3, %s749_s16  ;;  %s217_s11 = scalar_lea.vmem %s745_s4, %s749_s16 }
  0x10   : > { %v322_v3 = vsel %vm320_vm0, %v292_v2, 0  ;;  %v619_v12 = vld [vmem:[%s204_s27 + $0x28] sm:$0xff]  ;;  %v621_v13 = vld [vmem:[%s204_s27 + $0x38] sm:$0xff] }
  0x11   : > { %329 = vmatpush.bf16.msra.mxu0 %v322_v3  ;;  %624 = vmatpush.bf16.msra.mxu1 %v322_v3 }
  0x12   : > { %625 = vmatpush.bf16.msra.mxu2 %v322_v3  ;;  %626 = vmatpush.bf16.msra.mxu3 %v322_v3 }
  0x15   : > { %330 = vmatpush.bf16.msra.mxu0 %v623_v4  ;;  %627 = vmatpush.bf16.msra.mxu1 %v623_v4 }
  0x16   : > { %628 = vmatpush.bf16.msra.mxu2 %v623_v4  ;;  %629 = vmatpush.bf16.msra.mxu3 %v623_v4 }
  0x19   : > { %331 = vmatpush.bf16.msra.mxu0 %v622_v5  ;;  %630 = vmatpush.bf16.msra.mxu1 %v622_v5 }
  0x1a   : > { %631 = vmatpush.bf16.msra.mxu2 %v622_v5  ;;  %632 = vmatpush.bf16.msra.mxu3 %v622_v5 }
  0x1c   : > { %604 = vmatmul.msk.bf16.vlgmr.msra.gmra.mxu0 %vm295_vm1, %v614_v6  ;;  %606 = vmatmul.msk.bf16.vlgmr.msra.gmra.mxu1 %vm295_vm1, %v616_v7 }
  0x1d   : > { %608 = vmatmul.msk.bf16.vlgmr.msra.gmra.mxu2 %vm295_vm1, %v618_v8  ;;  %610 = vmatmul.msk.bf16.vlgmr.msra.gmra.mxu3 %vm295_vm1, %v620_v9 }
  0x2c   : > { %605 = vmatmul.msk.bf16.gmra.mxu0 %vm295_vm1, %v615_v10  ;;  %607 = vmatmul.msk.bf16.gmra.mxu1 %vm295_vm1, %v617_v11 }
  0x2d   : > { %609 = vmatmul.msk.bf16.gmra.mxu2 %vm295_vm1, %v619_v12  ;;  %611 = vmatmul.msk.bf16.gmra.mxu3 %vm295_vm1, %v621_v13 }
  0x99   : > { %v333_v14 = vpop.f32.mrf.mxu0  ;;  %v343_v15 = vpop.f32.mrf.mxu1 }
  0x9a   : > { %373 = vst [vmem:[%s712_s5] sm:$0xff] %v333_v14  ;;  %v411_v25 = vmul.f32 %v333_v14, %v333_v14  ;;  %v415_v37 = vmul.f32 %v343_v15, %v343_v15 }
  0x9b   : > { %377 = vst [vmem:[%s712_s5 + $0x20] sm:$0xff] %v343_v15 }
  0xa0   : > { %v353_v16 = vpop.f32.mrf.mxu2  ;;  %v363_v17 = vpop.f32.mrf.mxu3 }
  0xa1   : > { %v335_v18 = vpop.f32.mrf.mxu0  ;;  %v345_v19 = vpop.f32.mrf.mxu1  ;;  %381 = vst [vmem:[%s712_s5 + $0x40] sm:$0xff] %v353_v16  ;;  %v419_v51 = vmul.f32 %v353_v16, %v353_v16  ;;  %v423_v63 = vmul.f32 %v363_v17, %v363_v17 }
  0xa2   : > { %374 = vst [vmem:[%s712_s5 + $0x8] sm:$0xff] %v335_v18  ;;  %v412_v24 = vmul.f32 %v335_v18, %v335_v18  ;;  %v389_v26 = vadd.f32 %v335_v18, %v333_v14  ;;  %v416_v40 = vmul.f32 %v345_v19, %v345_v19 }
  0xa3   : > { %378 = vst [vmem:[%s712_s5 + $0x28] sm:$0xff] %v345_v19 }
  0xa4   : > { %385 = vst [vmem:[%s712_s5 + $0x60] sm:$0xff] %v363_v17  ;;  %v427_v28 = vadd.f32 %v412_v24, %v411_v25 }
  0xa8   : > { %v355_v20 = vpop.f32.mrf.mxu2  ;;  %v365_v21 = vpop.f32.mrf.mxu3 }
  0xa9   : > { %v338_v22 = vpop.f32.mrf.mxu0  ;;  %v348_v23 = vpop.f32.mrf.mxu1  ;;  %382 = vst [vmem:[%s712_s5 + $0x48] sm:$0xff] %v355_v20  ;;  %v420_v54 = vmul.f32 %v355_v20, %v355_v20  ;;  %v424_v2 = vmul.f32 %v365_v21, %v365_v21 }
  0xaa   : > { %375 = vst [vmem:[%s712_s5 + $0x10] sm:$0xff] %v338_v22  ;;  %v413_v27 = vmul.f32 %v338_v22, %v338_v22  ;;  %v390_v29 = vadd.f32 %v389_v26, %v338_v22  ;;  %v417_v43 = vmul.f32 %v348_v23, %v348_v23 }
  0xab   : > { %379 = vst [vmem:[%s712_s5 + $0x30] sm:$0xff] %v348_v23 }
  0xac   : > { %386 = vst [vmem:[%s712_s5 + $0x68] sm:$0xff] %v365_v21  ;;  %v428_v34 = vadd.f32 %v427_v28, %v413_v27 }
  0xb0   : > { %v358_v30 = vpop.f32.mrf.mxu2  ;;  %v368_v31 = vpop.f32.mrf.mxu3 }
  0xb1   : > { %v340_v32 = vpop.f32.mrf.mxu0  ;;  %v350_v33 = vpop.f32.mrf.mxu1  ;;  %383 = vst [vmem:[%s712_s5 + $0x50] sm:$0xff] %v358_v30  ;;  %v421_v58 = vmul.f32 %v358_v30, %v358_v30  ;;  %v425_v6 = vmul.f32 %v368_v31, %v368_v31 }
  0xb2   : > { %376 = vst [vmem:[%s712_s5 + $0x18] sm:$0xff] %v340_v32  ;;  %v391_v35 = vadd.f32 %v390_v29, %v340_v32  ;;  %v414_v36 = vmul.f32 %v340_v32, %v340_v32  ;;  %v418_v49 = vmul.f32 %v350_v33, %v350_v33 }
  0xb3   : > { %380 = vst [vmem:[%s712_s5 + $0x38] sm:$0xff] %v350_v33 }
  0xb4   : > { %v392_v38 = vadd.f32 %v391_v35, %v343_v15  ;;  %v429_v39 = vadd.f32 %v428_v34, %v414_v36  ;;  %387 = vst [vmem:[%s712_s5 + $0x70] sm:$0xff] %v368_v31 }
  0xb6   : > { %v430_v41 = vadd.f32 %v429_v39, %v415_v37  ;;  %v393_v42 = vadd.f32 %v392_v38, %v345_v19 }
  0xb8   : > { %v394_v44 = vadd.f32 %v393_v42, %v348_v23  ;;  %v431_v45 = vadd.f32 %v430_v41, %v416_v40  ;;  %v360_v46 = vpop.f32.mrf.mxu2  ;;  %v370_v47 = vpop.f32.mrf.mxu3 }
  0xb9   : > { %384 = vst [vmem:[%s712_s5 + $0x58] sm:$0xff] %v360_v46  ;;  %v422_v62 = vmul.f32 %v360_v46, %v360_v46  ;;  %v426_v10 = vmul.f32 %v370_v47, %v370_v47 }
  0xba   : > { %v395_v48 = vadd.f32 %v394_v44, %v350_v33  ;;  %v432_v50 = vadd.f32 %v431_v45, %v417_v43  ;;  %388 = vst [vmem:[%s712_s5 + $0x78] sm:$0xff] %v370_v47 }
  0xbc   : > { %v396_v52 = vadd.f32 %v395_v48, %v353_v16  ;;  %v433_v53 = vadd.f32 %v432_v50, %v418_v49 }
  0xbe   : > { %v434_v55 = vadd.f32 %v433_v53, %v419_v51  ;;  %v397_v56 = vadd.f32 %v396_v52, %v355_v20 }
  0xc0   : > { %v398_v57 = vadd.f32 %v397_v56, %v358_v30  ;;  %v435_v59 = vadd.f32 %v434_v55, %v420_v54 }
  0xc2   : > { %v436_v60 = vadd.f32 %v435_v59, %v421_v58  ;;  %v399_v61 = vadd.f32 %v398_v57, %v360_v46 }
  0xc4   : > { %v400_v0 = vadd.f32 %v399_v61, %v363_v17  ;;  %v437_v1 = vadd.f32 %v436_v60, %v422_v62 }
  0xc6   : > { %v438_v3 = vadd.f32 %v437_v1, %v423_v63  ;;  %v401_v4 = vadd.f32 %v400_v0, %v365_v21 }
  0xc8   : > { %v402_v5 = vadd.f32 %v401_v4, %v368_v31  ;;  %v439_v7 = vadd.f32 %v438_v3, %v424_v2 }
  0xca   : > { %v440_v8 = vadd.f32 %v439_v7, %v425_v6  ;;  %v403_v9 = vadd.f32 %v402_v5, %v370_v47 }
  0xcc   : > { %v404_v11 = vrot.slane %v403_v9, 4  ;;  %v441_v12 = vadd.f32 %v440_v8, %v426_v10 }
  0xce   : > { %v405_v13 = vadd.f32 %v404_v11, %v403_v9  ;;  %v442_v14 = vrot.slane %v441_v12, 4 }
  0xd0   : > { %v406_v15 = vrot.slane %v405_v13, 2  ;;  %v443_v16 = vadd.f32 %v442_v14, %v441_v12 }
  0xd2   : > { %v407_v17 = vadd.f32 %v406_v15, %v405_v13  ;;  %v444_v18 = vrot.slane %v443_v16, 2 }
  0xd4   : > { %v408_v19 = vrot.slane %v407_v17, 1  ;;  %v445_v20 = vadd.f32 %v444_v18, %v443_v16 }
  0xd6   : > { %v409_v21 = vadd.f32 %v408_v19, %v407_v17  ;;  %v446_v22 = vrot.slane %v445_v20, 1 }
  0xd8   : > { %410 = vst [vmem:[%s214_s8] sm:$0x1] %v409_v21  ;;  %v447_v23 = vadd.f32 %v446_v22, %v445_v20 }
  0xda   : > { %448 = vst [vmem:[%s217_s11] sm:$0x1] %v447_v23 }
  0xdb PF: > { %s15_s15 = sadd.s32 1, %s647_s15  }
  0xdc   : > { %p12_p5 = scmp.ge.s32.totalorder %s15_s15, 6  }
  0xde   :  { %14 = sbr.rel (!%p12_p5) target bundleno = 1 (0x1), region = 82 }

</bundles_post_ra>
